<compile_context>
chip_gen: v5e
topology: v5e:2x2
jax: 0.10.0
libtpu: 0.0.40
codegen_flags: <defaults>
</compile_context>

<pallas_src>
import random

import jax
import jax.numpy as jnp
import numpy as np
from jax.experimental import pallas as pl
from jax.experimental.pallas import tpu as pltpu


def _round_up(x, m):
    return ((x + m - 1) // m) * m


def _cdiv(a, b):
    return (a + b - 1) // b


def _vmem_capacity_bytes():
    try:
        return int(pltpu.get_tpu_info().vmem_capacity_bytes)
    except Exception:
        return 64 << 20  # conservative: v7x has 64 MiB per TensorCore


def mean_agg_kernel(mask_ref, emb_hi_ref, emb_lo_ref, inv_ref, out_ref):
    """out[i, :] = (sum_k mask[i, k] * (emb_hi + emb_lo)[k, :]) * inv_cnt[i]."""
    k = pl.program_id(1)

    @pl.when(k == 0)
    def _():
        out_ref[...] = jnp.zeros_like(out_ref)

    # mask holds exact 0/1; int8 -> bf16 cast feeds the MXU its native dtype.
    m = mask_ref[...].astype(jnp.bfloat16)
    acc = jnp.dot(m, emb_hi_ref[...], preferred_element_type=jnp.float32)
    acc = acc + jnp.dot(m, emb_lo_ref[...], preferred_element_type=jnp.float32)
    out_ref[...] += acc

    @pl.when(k == pl.num_programs(1) - 1)
    def _():
        out_ref[...] = out_ref[...] * inv_ref[...]


def mean_aggregate(mask_i8, emb_hi, emb_lo, inv_cnt, *, n_tile, tk, vmem_limit):
    """mask: (N_pad, U_pad) int8, emb_hi/lo: (U_pad, D_pad) bf16,
    inv_cnt: (N_pad, 1) f32  ->  (N_pad, D_pad) f32."""
    n_pad, u_pad = mask_i8.shape
    _, d_pad = emb_hi.shape
    assert n_pad % n_tile == 0 and u_pad % tk == 0 and d_pad % 128 == 0

    grid = (n_pad // n_tile, u_pad // tk)

    return pl.pallas_call(
        mean_agg_kernel,
        out_shape=jax.ShapeDtypeStruct((n_pad, d_pad), jnp.float32),
        grid_spec=pltpu.PrefetchScalarGridSpec(
            num_scalar_prefetch=0,
            grid=grid,
            in_specs=[
                pl.BlockSpec((n_tile, tk), lambda i, k: (i, k)),
                # (k, 0): with tk == U_pad this is the whole embed plane,
                # constant across the grid -> DMA'd once, VMEM-resident.
                pl.BlockSpec((tk, d_pad), lambda i, k: (k, 0)),
                pl.BlockSpec((tk, d_pad), lambda i, k: (k, 0)),
                pl.BlockSpec((n_tile, 1), lambda i, k: (i, 0)),
            ],
            out_specs=pl.BlockSpec((n_tile, d_pad), lambda i, k: (i, 0)),
        ),
        compiler_params=pltpu.CompilerParams(
            dimension_semantics=("parallel", "arbitrary"),
            vmem_limit_bytes=int(vmem_limit),
        ),
    )(mask_i8, emb_hi, emb_lo, inv_cnt)


def _choose_tiling(N, U, D):
    """Generation-aware tile sizes + VMEM limit for the dense mean-agg matmul."""
    cap = _vmem_capacity_bytes()
    budget = min(int(cap * 0.6), 96 << 20)  # ~38 MiB on v7x, ~76 MiB on v5e/v6e

    # Lane-dense output columns; 256-wide alignment fills v6e/v7x's 256-wide MXU.
    d_pad = 128 if D <= 128 else _round_up(D, 256)

    # N tiling: int8 mask packs 32 rows per native tile; cap the resident f32
    # out tile at ~half the budget; keep >= 2 programs on the parallel axis
    # when possible so v7x can shard it across both TensorCores.
    n_base = _round_up(max(N, 1), 32)
    n_cap = 512
    while n_cap > 32 and 2 * n_cap * (d_pad * 4 + 4) > budget // 2:
        n_cap //= 2
    n_cap = max(n_cap, 32)
    n_tiles = max(_cdiv(n_base, n_cap), 2 if n_base >= 64 else 1)
    n_tile = _round_up(_cdiv(n_base, n_tiles), 32)
    n_pad = n_tiles * n_tile

    # K tiling: largest tk (multiple of 128) whose double-buffered footprint
    # fits the budget; if the whole padded U fits, take it all so the embed
    # planes become VMEM-resident (single K step, no accumulator re-passes).
    u_base = _round_up(max(U, 1), 128)
    fixed = 2 * n_tile * 4 + 2 * n_tile * d_pad * 4       # inv + out (f32, 2 bufs)
    per_k = 2 * n_tile * 1 + 2 * 2 * d_pad * 2            # mask i8 + 2 bf16 planes
    tk_max = max(128, ((budget - fixed) // max(per_k, 1)) // 128 * 128)
    if tk_max >= u_base:
        tk, k_tiles = u_base, 1
    else:
        k_tiles = _cdiv(u_base, tk_max)
        tk = _round_up(_cdiv(u_base, k_tiles), 128)
    u_pad = k_tiles * tk

    vmem_needed = fixed + per_k * tk
    vmem_limit = min(max(vmem_needed + (4 << 20), 16 << 20), int(cap * 0.75))
    return d_pad, n_tile, n_pad, tk, u_pad, vmem_limit


def mean_aggregator_forward(nodes, to_neighs, feature_table, num_sample):
    """Host glue reproducing MeanAggregator.forward; hot matmul runs in Pallas."""
    # TODO(synk): neighbor sampling / set union are python-object ops with no
    # Pallas equivalent; they stay on host (deterministic via sorted iteration).
    _set = set
    _sample = random.sample
    samp_neighs = [
        _set(_sample(sorted(to_neigh), num_sample))
        if len(to_neigh) >= num_sample else to_neigh
        for to_neigh in to_neighs
    ]
    unique_nodes_list = sorted(set.union(*samp_neighs))
    unique_nodes = {n: i for i, n in enumerate(unique_nodes_list)}

    # embed_matrix = features(unique_nodes_list)
    embed_matrix = np.asarray(feature_table, dtype=np.float32)[
        np.array(unique_nodes_list)
    ]

    N = len(samp_neighs)
    U = len(unique_nodes_list)
    D = embed_matrix.shape[1]

    mask = np.zeros((N, U), dtype=np.float32)
    column_indices = [unique_nodes[n] for sn in samp_neighs for n in sn]
    row_indices = [i for i in range(N) for _ in range(len(samp_neighs[i]))]
    mask[row_indices, column_indices] = 1.0

    d_pad, n_tile, n_pad, tk, u_pad, vmem_limit = _choose_tiling(N, U, D)

    # int8 mask: 0/1 is exact; dominant HBM stream shrinks 4x vs f32.
    mask_p = np.zeros((n_pad, u_pad), dtype=np.int8)
    mask_p[:N, :U] = mask.astype(np.int8)

    emb_p = np.zeros((u_pad, d_pad), dtype=np.float32)
    emb_p[:U, :D] = embed_matrix

    # hi/lo bf16 split: hi = bf16(x), lo = bf16(x - f32(hi)).  Two native bf16
    # MXU passes with f32 accumulation reproduce the f32 matmul to ~4e-6 rel.
    emb_f32 = jnp.asarray(emb_p)
    emb_hi = emb_f32.astype(jnp.bfloat16)
    emb_lo = (emb_f32 - emb_hi.astype(jnp.float32)).astype(jnp.bfloat16)

    # Host-side reciprocal neighbor counts.  Padded rows get 1.0 (their mask
    # rows are all-zero -> output 0, sliced off).  A genuinely empty neighbor
    # set gives inf -> NaN output, matching PyTorch's 0/0 divide behavior.
    counts = mask.sum(axis=1)
    inv_cnt = np.ones((n_pad, 1), dtype=np.float32)
    inv_cnt[:N, 0] = np.where(counts > 0, 1.0 / np.maximum(counts, 1.0), np.inf)

    out = mean_aggregate(
        jnp.asarray(mask_p),
        emb_hi,
        emb_lo,
        jnp.asarray(inv_cnt),
        n_tile=n_tile,
        tk=tk,
        vmem_limit=vmem_limit,
    )
    return out[:N, :D], mask, embed_matrix


if __name__ == "__main__":
    random.seed(0)

    # Synthetic graph: 64 total nodes, feat_dim=32, num_sample=5, batch of 8.
    num_total_nodes = 64
    feat_dim = 32
    num_sample = 5
    batch = 8

    key = jax.random.PRNGKey(0)
    feature_table = np.asarray(
        jax.random.normal(key, (num_total_nodes, feat_dim), jnp.float32)
    )

    nodes = list(range(batch))
    to_neighs = []
    for i in range(batch):
        deg = random.randint(3, 10)
        to_neighs.append(set(random.sample(range(num_total_nodes), deg)))

    to_feats, mask_np, embed_np = mean_aggregator_forward(
        nodes, to_neighs, feature_table, num_sample
    )
    to_feats = jax.block_until_ready(to_feats)

    # Reference (same math as the PyTorch module) to validate the kernel.
    num_neigh = mask_np.sum(1, keepdims=True)
    ref = (mask_np / num_neigh) @ embed_np
    # hi/lo bf16 split keeps the error ~4e-6 relative; allow a small atol.
    np.testing.assert_allclose(np.asarray(to_feats), ref, rtol=1e-5, atol=5e-5)

    print("KERNEL_OK")
</pallas_src>

<mosaic_0001>
module attributes {stable_mosaic.version = 11 : i64} {
  func.func @mean_agg_kernel(%arg0: i32, %arg1: i32, %arg2: memref<32x128xi8, #tpu.memory_space<vmem>>, %arg3: memref<128x128xbf16, #tpu.memory_space<vmem>>, %arg4: memref<128x128xbf16, #tpu.memory_space<vmem>>, %arg5: memref<32x1xf32, #tpu.memory_space<vmem>>, %arg6: memref<32x128xf32, #tpu.memory_space<vmem>>) attributes {dimension_semantics = [#tpu.dimension_semantics<parallel>, #tpu.dimension_semantics<arbitrary>], iteration_bounds = array<i64: 1, 1>, scalar_prefetch = 0 : i64, scratch_operands = 0 : i64, tpu.core_type = #tpu.core_type<tc>, window_params = [{transform_indices = @transform_0, window_bounds = array<i64: 32, 128>}, {transform_indices = @transform_1, window_bounds = array<i64: 128, 128>}, {transform_indices = @transform_2, window_bounds = array<i64: 128, 128>}, {transform_indices = @transform_3, window_bounds = array<i64: 32, 1>}, {transform_indices = @transform_4, window_bounds = array<i64: 32, 128>}]} {
    %c0_i32 = arith.constant 0 : i32
    %0 = arith.cmpi eq, %arg1, %c0_i32 : i32
    %1 = arith.extui %0 : i1 to i32
    %c0_i32_0 = arith.constant 0 : i32
    %2 = arith.cmpi ne, %1, %c0_i32_0 : i32
    scf.if %2 {
      %cst_13 = arith.constant 0.000000e+00 : f32
      %16 = vector.broadcast %cst_13 : f32 to vector<32x128xf32>
      %c0_14 = arith.constant 0 : index
      %c0_15 = arith.constant 0 : index
      %17 = vector.load %arg6[%c0_14, %c0_15] : memref<32x128xf32, #tpu.memory_space<vmem>>, vector<32x128xf32>
      tpu.vector_store %arg6[%c0_14, %c0_15], %16 {strides = array<i32>} : memref<32x128xf32, #tpu.memory_space<vmem>>, vector<32x128xf32>,
    } else {
    }
    %c0 = arith.constant 0 : index
    %c0_1 = arith.constant 0 : index
    %3 = vector.load %arg2[%c0, %c0_1] : memref<32x128xi8, #tpu.memory_space<vmem>>, vector<32x128xi8>
    %4 = arith.sitofp %3 : vector<32x128xi8> to vector<32x128xbf16>
    %c0_2 = arith.constant 0 : index
    %c0_3 = arith.constant 0 : index
    %5 = vector.load %arg3[%c0_2, %c0_3] : memref<128x128xbf16, #tpu.memory_space<vmem>>, vector<128x128xbf16>
    %cst = arith.constant dense<0.000000e+00> : vector<32x128xf32>
    %6 = tpu.matmul %4, %5, %cst {dimension_numbers = #tpu.dot_dimension_numbers<[1], [0], [0], [1], [0, 0, 1, 1], [], []>} : vector<32x128xbf16>, vector<128x128xbf16>, vector<32x128xf32> -> vector<32x128xf32>
    %c0_4 = arith.constant 0 : index
    %c0_5 = arith.constant 0 : index
    %7 = vector.load %arg4[%c0_4, %c0_5] : memref<128x128xbf16, #tpu.memory_space<vmem>>, vector<128x128xbf16>
    %cst_6 = arith.constant dense<0.000000e+00> : vector<32x128xf32>
    %8 = tpu.matmul %4, %7, %cst_6 {dimension_numbers = #tpu.dot_dimension_numbers<[1], [0], [0], [1], [0, 0, 1, 1], [], []>} : vector<32x128xbf16>, vector<128x128xbf16>, vector<32x128xf32> -> vector<32x128xf32>
    %9 = arith.addf %6, %8 : vector<32x128xf32>
    %c0_7 = arith.constant 0 : index
    %c0_8 = arith.constant 0 : index
    %10 = vector.load %arg6[%c0_7, %c0_8] : memref<32x128xf32, #tpu.memory_space<vmem>>, vector<32x128xf32>
    %11 = arith.addf %10, %9 : vector<32x128xf32>
    %c0_9 = arith.constant 0 : index
    %c0_10 = arith.constant 0 : index
    %12 = vector.load %arg6[%c0_9, %c0_10] : memref<32x128xf32, #tpu.memory_space<vmem>>, vector<32x128xf32>
    tpu.vector_store %arg6[%c0_9, %c0_10], %11 {strides = array<i32>} : memref<32x128xf32, #tpu.memory_space<vmem>>, vector<32x128xf32>,
    %c0_i32_11 = arith.constant 0 : i32
    %13 = arith.cmpi eq, %arg1, %c0_i32_11 : i32
    %14 = arith.extui %13 : i1 to i32
    %c0_i32_12 = arith.constant 0 : i32
    %15 = arith.cmpi ne, %14, %c0_i32_12 : i32
    scf.if %15 {
      %c0_13 = arith.constant 0 : index
      %c0_14 = arith.constant 0 : index
      %16 = vector.load %arg6[%c0_13, %c0_14] : memref<32x128xf32, #tpu.memory_space<vmem>>, vector<32x128xf32>
      %c0_15 = arith.constant 0 : index
      %c0_16 = arith.constant 0 : index
      %17 = vector.load %arg5[%c0_15, %c0_16] : memref<32x1xf32, #tpu.memory_space<vmem>>, vector<32x1xf32>
      %18 = vector.broadcast %17 : vector<32x1xf32> to vector<32x128xf32>
      %19 = arith.mulf %16, %18 : vector<32x128xf32>
      %c0_17 = arith.constant 0 : index
      %c0_18 = arith.constant 0 : index
      %20 = vector.load %arg6[%c0_17, %c0_18] : memref<32x128xf32, #tpu.memory_space<vmem>>, vector<32x128xf32>
      tpu.vector_store %arg6[%c0_17, %c0_18], %19 {strides = array<i32>} : memref<32x128xf32, #tpu.memory_space<vmem>>, vector<32x128xf32>,
    } else {
    }
    return
  }
  func.func @transform_0(%arg0: i32, %arg1: i32) -> (i32, i32) {
    %c0_i32 = arith.constant 0 : i32
    return %arg0, %arg1 : i32, i32
  }
  func.func @transform_1(%arg0: i32, %arg1: i32) -> (i32, i32) {
    %c0_i32 = arith.constant 0 : i32
    %c0_i32_0 = arith.constant 0 : i32
    return %arg1, %c0_i32 : i32, i32
  }
  func.func @transform_2(%arg0: i32, %arg1: i32) -> (i32, i32) {
    %c0_i32 = arith.constant 0 : i32
    %c0_i32_0 = arith.constant 0 : i32
    return %arg1, %c0_i32 : i32, i32
  }
  func.func @transform_3(%arg0: i32, %arg1: i32) -> (i32, i32) {
    %c0_i32 = arith.constant 0 : i32
    %c0_i32_0 = arith.constant 0 : i32
    return %arg0, %c0_i32 : i32, i32
  }
  func.func @transform_4(%arg0: i32, %arg1: i32) -> (i32, i32) {
    %c0_i32 = arith.constant 0 : i32
    %c0_i32_0 = arith.constant 0 : i32
    return %arg0, %c0_i32 : i32, i32
  }
}

</mosaic_0001>

<bundles_post_ra>
// kernel: tpu_custom_call.1
= control target key start
LH: loop header
LB: loop body
LE: loop exit
PB: predicated region body
PF: predicated region fallthrough
CT: control target
= control target key end

     0   :  { %9 = vsyncpa [#allocation3], 0  ;;  %s548_s0 = inlined_call_operand.vmem [shape: s8[32,128], index: 0, kind: input, shape index: {}]   ;;  %s549_s1 = inlined_call_operand.hbm [shape: bf16[128,128], index: 1, kind: input, shape index: {}]   ;;  %s550_s2 = inlined_call_operand.hbm [shape: bf16[128,128], index: 2, kind: input, shape index: {}]   ;;  %s551_s3 = inlined_call_operand.vmem [shape: f32[32,1], index: 3, kind: input, shape index: {}]   ;;  %s552_s4 = inlined_call_operand.hbm [shape: f32[32,128], index: 4, kind: output, shape index: {}]  }
   0x1   :  { %10 = vsyncpa [#allocation6], 0 }
   0x2   :  { %11 = vsyncpa [#allocation4], 0  ;;  %s18_s17 = sshll.u32 %s549_s1, 4  ;;  %s491_s18 = smov [#allocation2]   ;;  %s19_s17 = int_to_ptr.hbm [resolvable:$true] %s18_s17 }
   0x3   :  { %s20_s19 = sshll.u32 %s491_s18, 4  ;;  %s31_s22 = sshll.u32 %s550_s2, 4  ;;  %s21_s19 = int_to_ptr.vmem [resolvable:$true] %s20_s19  ;;  %s32_s22 = int_to_ptr.hbm [resolvable:$true] %s31_s22 }
   0x4   :  { %s492_s23 = smov 64   ;;  %s493_s24 = smov 4  }
   0x5   :  { %26 = dma.hbm_to_vmem [thread:$0]  %s19_s17, 1024, %s21_s19, [#allocation3], %s492_s23, %s492_s23, %s493_s24  }
   0x6   :  { %s494_s25 = smov [#allocation5]  }
   0x7   :  { %s33_s26 = sshll.u32 %s494_s25, 4  ;;  %s34_s26 = int_to_ptr.vmem [resolvable:$true] %s33_s26 }
   0x8   :  { %39 = dma.hbm_to_vmem [thread:$0]  %s32_s22, 1024, %s34_s26, [#allocation6], %s492_s23, %s492_s23, %s493_s24  }
   0x9   :  { %485 = dma.done.wait [#allocation3], 1024  }
   0xa   :  { %486 = vsyncadd [#allocation3], 4294966272 }
   0xb   :  { %487 = dma.done.wait [#allocation6], 1024  }
   0xc   :  { %488 = vsyncadd [#allocation6], 4294966272  ;;  %v385_v0 = vld [vmem:[#allocation5 + $0x38] sm:$0xff]  ;;  %v384_v2 = vld [vmem:[#allocation5 + $0x30] sm:$0xff]  ;;  %v495_v4 = vmov 0   ;;  %s292_s11 = sshll.u32 %s552_s4, 4  ;;  %s293_s11 = int_to_ptr.hbm [resolvable:$true] %s292_s11 }
   0xd   :  { %v377_v1 = vld [vmem:[#allocation2 + $0x38] sm:$0xff]  ;;  %149 = vmatpush.bf16.msra.mxu0 %v385_v0  ;;  %386 = vmatpush.bf16.msra.mxu2 %v385_v0  ;;  %v376_v3 = vld [vmem:[#allocation2 + $0x30] sm:$0xff]  ;;  %v383_v6 = vld [vmem:[#allocation5 + $0x28] sm:$0xff]  ;;  %s497_s12 = smov 128   ;;  %s498_s13 = smov 8  }
   0xe   :  { %216 = vmatpush.bf16.msra.mxu1 %v377_v1  ;;  %394 = vmatpush.bf16.msra.mxu3 %v377_v1  ;;  %v256_v5 = vld [vmem:[%s551_s3 + $0x10] sm:$0xff]  ;;  %v254_v7 = vld [vmem:[%s551_s3] sm:$0xff]  ;;  %v375_v8 = vld [vmem:[#allocation2 + $0x28] sm:$0xff] }
   0xf   :  { %412 = vset.pattern.permute.xlu1 %v495_v4  ;;  %411 = vset.pattern.permute.xlu0 %v495_v4  ;;  %v382_v9 = vld [vmem:[#allocation5 + $0x20] sm:$0xff]  ;;  %v257_v11 = vld [vmem:[%s551_s3 + $0x18] sm:$0xff]  ;;  %v255_v12 = vld [vmem:[%s551_s3 + $0x8] sm:$0xff] }
  0x10   :  { %270 = vperm.xlu1 %412, %v256_v5   ;;  %260 = vperm.xlu0 %411, %v254_v7   ;;  %v374_v10 = vld [vmem:[#allocation2 + $0x20] sm:$0xff]  ;;  %v381_v13 = vld [vmem:[#allocation5 + $0x18] sm:$0xff]  ;;  %v380_v15 = vld [vmem:[#allocation5 + $0x10] sm:$0xff] }
  0x11   :  { %150 = vmatpush.bf16.msra.mxu0 %v384_v2  ;;  %387 = vmatpush.bf16.msra.mxu2 %v384_v2  ;;  %v373_v14 = vld [vmem:[#allocation2 + $0x18] sm:$0xff]  ;;  %v58_v16 = vld [vmem:[%s548_s0] sm:$0xff]  ;;  %v372_v17 = vld [vmem:[#allocation2 + $0x10] sm:$0xff]  ;;  %s496_s0 = smov [#allocation7]  }
  0x12   :  { %217 = vmatpush.bf16.msra.mxu1 %v376_v3  ;;  %395 = vmatpush.bf16.msra.mxu3 %v376_v3  ;;  %v59_v18 = vunpack.c.0.s8 %v58_v16  ;;  %v60_v19 = vunpack.c.1.s8 %v58_v16  ;;  %v61_v20 = vunpack.c.2.s8 %v58_v16  ;;  %v62_v21 = vunpack.c.3.s8 %v58_v16  ;;  %v379_v22 = vld [vmem:[#allocation5 + $0x8] sm:$0xff]  ;;  %v378_v28 = vld [vmem:[#allocation5] sm:$0xff]  ;;  %s290_s3 = sshll.u32 %s496_s0, 4  ;;  %s291_s3 = int_to_ptr.vmem [resolvable:$true] %s290_s3 }
  0x13   :  { %v371_v23 = vld [vmem:[#allocation2 + $0x8] sm:$0xff]  ;;  %v370_v29 = vld [vmem:[#allocation2] sm:$0xff] }
  0x14   :  { %v63_v24 = vcvt.s32.f32 %v59_v18  ;;  %v64_v25 = vcvt.s32.f32 %v60_v19  ;;  %v65_v26 = vcvt.s32.f32 %v61_v20  ;;  %v66_v27 = vcvt.s32.f32 %v62_v21 }
  0x15   :  { %151 = vmatpush.bf16.msra.mxu0 %v383_v6  ;;  %388 = vmatpush.bf16.msra.mxu2 %v383_v6 }
  0x16   :  { %218 = vmatpush.bf16.msra.mxu1 %v375_v8  ;;  %396 = vmatpush.bf16.msra.mxu3 %v375_v8  ;;  %v67_v30 = vpack.c.bf16 %v64_v25, %v63_v24  ;;  %v68_v31 = vpack.c.bf16 %v66_v27, %v65_v26 }
  0x18   :  { %275 = vperm.xlu1 %412, %v257_v11   ;;  %265 = vperm.xlu0 %411, %v255_v12  }
  0x19   :  { %152 = vmatpush.bf16.msra.mxu0 %v382_v9  ;;  %389 = vmatpush.bf16.msra.mxu2 %v382_v9 }
  0x1a   :  { %219 = vmatpush.bf16.msra.mxu1 %v374_v10  ;;  %397 = vmatpush.bf16.msra.mxu3 %v374_v10 }
  0x1d   :  { %153 = vmatpush.bf16.msra.mxu0 %v381_v13  ;;  %390 = vmatpush.bf16.msra.mxu2 %v381_v13 }
  0x1e   :  { %220 = vmatpush.bf16.msra.mxu1 %v373_v14  ;;  %398 = vmatpush.bf16.msra.mxu3 %v373_v14 }
  0x21   :  { %154 = vmatpush.bf16.msra.mxu0 %v380_v15  ;;  %391 = vmatpush.bf16.msra.mxu2 %v380_v15 }
  0x22   :  { %221 = vmatpush.bf16.msra.mxu1 %v372_v17  ;;  %399 = vmatpush.bf16.msra.mxu3 %v372_v17 }
  0x25   :  { %155 = vmatpush.bf16.msra.mxu0 %v379_v22  ;;  %392 = vmatpush.bf16.msra.mxu2 %v379_v22 }
  0x26   :  { %222 = vmatpush.bf16.msra.mxu1 %v371_v23  ;;  %400 = vmatpush.bf16.msra.mxu3 %v371_v23 }
  0x29   :  { %156 = vmatpush.bf16.msra.mxu0 %v378_v28  ;;  %393 = vmatpush.bf16.msra.mxu2 %v378_v28 }
  0x2a   :  { %223 = vmatpush.bf16.msra.mxu1 %v370_v29  ;;  %401 = vmatpush.bf16.msra.mxu3 %v370_v29 }
  0x2c   :  { %157 = vmatmul.bf16.vlgmr.msra.gmra.mxu0 %v67_v30  ;;  %162 = vmatmul.bf16.vlgmr.msra.gmra.mxu2 %v68_v31 }
  0x2d   :  { %224 = vmatmul.bf16.vlgmr.msra.gmra.mxu1 %v67_v30  ;;  %229 = vmatmul.bf16.vlgmr.msra.gmra.mxu3 %v68_v31 }
  0x82   :  { %v261_v35 = vpop.permute.xlu0 %260  ;;  %v271_v42 = vpop.permute.xlu1 %270 }
  0x8a   :  { %v266_v45 = vpop.permute.xlu0 %265  ;;  %v276_v50 = vpop.permute.xlu1 %275 }
  0xa9   :  { %v158_v32 = vpop.f32.mrf.mxu0 }
  0xaa   :  { %v225_v33 = vpop.f32.mrf.mxu1 }
  0xab   :  { %v226_v34 = vadd.f32 %v225_v33, %v158_v32 }
  0xad   :  { %v278_v37 = vmul.f32 %v261_v35, %v226_v34 }
  0xaf   :  { %v163_v36 = vpop.f32.mrf.mxu2  ;;  %282 = vst [vmem:[#allocation7] sm:$0xff] %v278_v37 }
  0xb0   :  { %v230_v38 = vpop.f32.mrf.mxu3 }
  0xb1   :  { %v231_v39 = vadd.f32 %v230_v38, %v163_v36  ;;  %v160_v40 = vpop.f32.mrf.mxu0 }
  0xb2   :  { %v227_v41 = vpop.f32.mrf.mxu1 }
  0xb3   :  { %v228_v43 = vadd.f32 %v227_v41, %v160_v40  ;;  %v280_v44 = vmul.f32 %v271_v42, %v231_v39 }
  0xb5   :  { %284 = vst [vmem:[#allocation7 + $0x10] sm:$0xff] %v280_v44  ;;  %v279_v47 = vmul.f32 %v266_v45, %v228_v43 }
  0xb7   :  { %v165_v46 = vpop.f32.mrf.mxu2  ;;  %283 = vst [vmem:[#allocation7 + $0x8] sm:$0xff] %v279_v47 }
  0xb8   :  { %v232_v48 = vpop.f32.mrf.mxu3 }
  0xb9   :  { %v233_v49 = vadd.f32 %v232_v48, %v165_v46 }
  0xbb   :  { %v281_v51 = vmul.f32 %v276_v50, %v233_v49 }
  0xbd   :  { %285 = vst [vmem:[#allocation7 + $0x18] sm:$0xff] %v281_v51 }
  0xbe   :  { %298 = dma.vmem_to_hbm [thread:$0]  %s291_s3, 512, %s293_s11, [#allocation4], %s497_s12, %s497_s12, %s498_s13  }
  0xbf   :  { %489 = dma.done.wait [#allocation4], 512  }
  0xc0   :  { %490 = vsyncadd [#allocation4], 4294966784 }
  0xc1   :  { %303 = vsyncpa [#allocation3], 1 }
  0xc2   :  { %304 = vsyncpa [#allocation6], 1 }
  0xc3   :  { %305 = vsyncpa [#allocation4], 1 }

</bundles_post_ra>
